<compile_context>
chip_gen: v5e
topology: v5e:2x2
jax: 0.10.0
libtpu: 0.0.40
codegen_flags: <defaults>
</compile_context>

<pallas_src>
import jax
import jax.numpy as jnp
from jax.experimental import pallas as pl
from jax.experimental.pallas import tpu as pltpu

NUM_CLASSES = 11
CLASS_PAD = 128          # padded class/lane dim: unmasked vst, full MXU column
FEAT_CH = 256
OUTPUT_STRIDE = 8
IN_CH = 3


def _round_up(x, m):
    return ((x + m - 1) // m) * m


# ----------------------------------------------------------------------------
# Kernel 1: head.
#   projection (3 -> 256, ReLU) on the VPU (broadcast FMAs, keeps the MXU free)
#   replaced classifier 1x1 conv (256 -> CLASS_PAD) as a bf16 MXU matmul.
# Tiled over rows M = N*Hf*Wf; output last dim is 128 (lane-dense).
# ----------------------------------------------------------------------------
def head_kernel(x_ref, wp_ref, bp_ref, wc_ref, bc_ref, o_ref):
    # x_ref:  (tm, 3) f32    wp_ref: (3, 256) f32    bp_ref: (1, 256) f32
    # wc_ref: (256, 128) bf16 (zero-padded classes)  bc_ref: (1, 128) f32
    # o_ref:  (tm, 128) f32
    x = x_ref[...]
    cin = x_ref.shape[1]
    acc = x[:, 0:1] * wp_ref[0:1, :]                 # VPU broadcast FMA
    for c in range(1, cin):                          # static unroll (cin = 3)
        acc = acc + x[:, c:c + 1] * wp_ref[c:c + 1, :]
    feat = jnp.maximum(acc + bp_ref[...], 0.0)       # (tm, 256) f32
    logits = jnp.dot(feat.astype(jnp.bfloat16), wc_ref[...],
                     preferred_element_type=jnp.float32)   # bf16 MXU, f32 acc
    o_ref[...] = logits + bc_ref[...]


def run_head(x_rows, wp, bp, wc_pad_bf16, bc_pad, *, tm=512):
    M, cin = x_rows.shape
    kpad = wc_pad_bf16.shape[1]
    tm = min(tm, _round_up(M, 8))
    Mp = _round_up(M, tm)
    if Mp != M:
        x_rows = jnp.pad(x_rows, ((0, Mp - M), (0, 0)))
    out = pl.pallas_call(
        head_kernel,
        out_shape=jax.ShapeDtypeStruct((Mp, kpad), jnp.float32),
        grid=(Mp // tm,),
        in_specs=[
            pl.BlockSpec((tm, cin), lambda i: (i, 0)),
            pl.BlockSpec(wp.shape, lambda i: (0, 0)),
            pl.BlockSpec(bp.shape, lambda i: (0, 0)),
            pl.BlockSpec(wc_pad_bf16.shape, lambda i: (0, 0)),
            pl.BlockSpec(bc_pad.shape, lambda i: (0, 0)),
        ],
        out_specs=pl.BlockSpec((tm, kpad), lambda i: (i, 0)),
        compiler_params=pltpu.CompilerParams(
            dimension_semantics=("parallel",),
            vmem_limit_bytes=64 * 1024 * 1024),
    )(x_rows, wp, bp, wc_pad_bf16, bc_pad)
    return out[:M]


# ----------------------------------------------------------------------------
# Kernel 2: generic row-tiled 2D matmul  (M, K) @ (K, N) -> (M, N), f32.
# Used twice for the bilinear upsample; each pass puts the upsampled spatial
# axis on the lane dim (W then H), so stores are unmasked and MXU-shaped at
# real DeepLab resolutions.  Tiles of (tm, N) stay small (~1 MB), so the
# pipeline fits comfortably in v7x's 64 MiB VMEM as well.
# ----------------------------------------------------------------------------
def matmul_kernel(a_ref, b_ref, o_ref):
    o_ref[...] = jnp.dot(a_ref[...], b_ref[...],
                         preferred_element_type=jnp.float32)


def run_rowwise_matmul(a, b, *, tm=512):
    M, K = a.shape
    N = b.shape[1]
    tm = min(tm, _round_up(M, 8))
    Mp = _round_up(M, tm)
    if Mp != M:
        a = jnp.pad(a, ((0, Mp - M), (0, 0)))
    out = pl.pallas_call(
        matmul_kernel,
        out_shape=jax.ShapeDtypeStruct((Mp, N), jnp.float32),
        grid=(Mp // tm,),
        in_specs=[
            pl.BlockSpec((tm, K), lambda i: (i, 0)),
            pl.BlockSpec((K, N), lambda i: (0, 0)),
        ],
        out_specs=pl.BlockSpec((tm, N), lambda i: (i, 0)),
        compiler_params=pltpu.CompilerParams(
            dimension_semantics=("parallel",),
            vmem_limit_bytes=64 * 1024 * 1024),
    )(a, b)
    return out[:M]


# ----------------------------------------------------------------------------
# Bilinear interpolation matrix (matches PyTorch bilinear, align_corners=False)
# ----------------------------------------------------------------------------
def bilinear_matrix(out_size, in_size):
    scale = in_size / out_size
    o = jnp.arange(out_size, dtype=jnp.float32)
    src = (o + 0.5) * scale - 0.5
    src = jnp.maximum(src, 0.0)                      # PyTorch clamps to >= 0
    i0 = jnp.floor(src).astype(jnp.int32)
    i0 = jnp.clip(i0, 0, in_size - 1)
    i1 = jnp.clip(i0 + 1, 0, in_size - 1)
    lam = src - i0.astype(jnp.float32)
    A = (jnp.zeros((out_size, in_size), jnp.float32)
         .at[jnp.arange(out_size), i0].add(1.0 - lam)
         .at[jnp.arange(out_size), i1].add(lam))
    return A


# ----------------------------------------------------------------------------
# Forward wrapper (NCHW in, NCHW out -- like BasicModel2.forward)
# ----------------------------------------------------------------------------
def basic_model2_forward(x, params):
    N, C, H, W = x.shape
    Hf, Wf = H // OUTPUT_STRIDE, W // OUTPUT_STRIDE

    # TODO(synk): stand-in backbone (8x8 average pool to the stride-8 grid).
    pooled = x.reshape(N, C, Hf, OUTPUT_STRIDE, Wf, OUTPUT_STRIDE).mean(axis=(3, 5))
    rows = pooled.transpose(0, 2, 3, 1).reshape(N * Hf * Wf, C)      # channels last

    # pad classifier to a lane-dense 128-wide output; bf16 weights for the MXU
    wc_pad = jnp.zeros((FEAT_CH, CLASS_PAD), jnp.float32)
    wc_pad = wc_pad.at[:, :NUM_CLASSES].set(params['wc'])
    bc_pad = jnp.zeros((1, CLASS_PAD), jnp.float32)
    bc_pad = bc_pad.at[:, :NUM_CLASSES].set(params['bc'])

    logits_rows = run_head(rows, params['wp'], params['bp'],
                           wc_pad.astype(jnp.bfloat16), bc_pad)      # (M, 128)
    logits_rows = logits_rows[:, :NUM_CLASSES]                       # drop pad lanes

    B = N * NUM_CLASSES
    logits = (logits_rows.reshape(N, Hf, Wf, NUM_CLASSES)
              .transpose(0, 3, 1, 2)                                 # (N, K, Hf, Wf)
              .reshape(B, Hf, Wf))

    # bilinear upsample (align_corners=False) as two lane-dense 2D matmuls
    awT = bilinear_matrix(W, Wf).T                                   # (Wf, W)
    ahT = bilinear_matrix(H, Hf).T                                   # (Hf, H)

    t = run_rowwise_matmul(logits.reshape(B * Hf, Wf), awT)          # (B*Hf, W)
    t = t.reshape(B, Hf, W).transpose(0, 2, 1).reshape(B * W, Hf)    # layout plumbing (XLA side)
    u = run_rowwise_matmul(t, ahT)                                   # (B*W, H)
    up = u.reshape(B, W, H).transpose(0, 2, 1)                       # (B, H, W)

    return up.reshape(N, NUM_CLASSES, H, W)


def init_params(key):
    k1, k2, k3, k4 = jax.random.split(key, 4)
    wp = jax.random.normal(k1, (IN_CH, FEAT_CH), jnp.float32) * 0.1
    bp = jax.random.normal(k2, (1, FEAT_CH), jnp.float32) * 0.01
    wc = jax.random.normal(k3, (FEAT_CH, NUM_CLASSES), jnp.float32) * 0.05
    bc = jax.random.normal(k4, (1, NUM_CLASSES), jnp.float32) * 0.01
    return {'wp': wp, 'bp': bp, 'wc': wc, 'bc': bc}


if __name__ == "__main__":
    key = jax.random.PRNGKey(0)
    x = jax.random.normal(key, (2, IN_CH, 16, 16), jnp.float32)   # NCHW like PyTorch
    params = init_params(jax.random.PRNGKey(42))

    out = jax.jit(basic_model2_forward)(x, params)
    out = jax.block_until_ready(out)

    assert out.shape == (2, NUM_CLASSES, 16, 16), out.shape
    assert out.dtype == jnp.float32
    assert bool(jnp.all(jnp.isfinite(out)))
    print("KERNEL_OK")
</pallas_src>

<mosaic_0001>
module attributes {stable_mosaic.version = 11 : i64} {
  func.func @head_kernel(%arg0: i32, %arg1: memref<8x3xf32, #tpu.memory_space<vmem>>, %arg2: memref<3x256xf32, #tpu.memory_space<vmem>>, %arg3: memref<1x256xf32, #tpu.memory_space<vmem>>, %arg4: memref<256x128xbf16, #tpu.memory_space<vmem>>, %arg5: memref<1x128xf32, #tpu.memory_space<vmem>>, %arg6: memref<8x128xf32, #tpu.memory_space<vmem>>) attributes {dimension_semantics = [#tpu.dimension_semantics<parallel>], iteration_bounds = array<i64: 1>, scalar_prefetch = 0 : i64, scratch_operands = 0 : i64, tpu.core_type = #tpu.core_type<tc>, window_params = [{transform_indices = @transform_0, window_bounds = array<i64: 8, 3>}, {pipeline_mode = #tpu.pipeline_mode<synchronous>, transform_indices = @transform_1, window_bounds = array<i64: 3, 256>}, {pipeline_mode = #tpu.pipeline_mode<synchronous>, transform_indices = @transform_2, window_bounds = array<i64: 1, 256>}, {pipeline_mode = #tpu.pipeline_mode<synchronous>, transform_indices = @transform_3, window_bounds = array<i64: 256, 128>}, {pipeline_mode = #tpu.pipeline_mode<synchronous>, transform_indices = @transform_4, window_bounds = array<i64: 1, 128>}, {transform_indices = @transform_5, window_bounds = array<i64: 8, 128>}]} {
    %c0 = arith.constant 0 : index
    %c0_0 = arith.constant 0 : index
    %0 = vector.load %arg1[%c0, %c0_0] : memref<8x3xf32, #tpu.memory_space<vmem>>, vector<8x3xf32>
    %1 = vector.extract_strided_slice %0 {offsets = [0, 0], sizes = [8, 1], strides = [1, 1]} : vector<8x3xf32> to vector<8x1xf32>
    %c0_1 = arith.constant 0 : index
    %c0_2 = arith.constant 0 : index
    %2 = vector.load %arg2[%c0_1, %c0_2] : memref<3x256xf32, #tpu.memory_space<vmem>>, vector<1x256xf32>
    %3 = vector.broadcast %1 : vector<8x1xf32> to vector<8x256xf32>
    %4 = vector.broadcast %2 : vector<1x256xf32> to vector<8x256xf32>
    %5 = arith.mulf %3, %4 : vector<8x256xf32>
    %6 = vector.extract_strided_slice %0 {offsets = [0, 1], sizes = [8, 1], strides = [1, 1]} : vector<8x3xf32> to vector<8x1xf32>
    %c1 = arith.constant 1 : index
    %c0_3 = arith.constant 0 : index
    %7 = vector.load %arg2[%c1, %c0_3] : memref<3x256xf32, #tpu.memory_space<vmem>>, vector<1x256xf32>
    %8 = vector.broadcast %6 : vector<8x1xf32> to vector<8x256xf32>
    %9 = vector.broadcast %7 : vector<1x256xf32> to vector<8x256xf32>
    %10 = arith.mulf %8, %9 : vector<8x256xf32>
    %11 = arith.addf %5, %10 : vector<8x256xf32>
    %12 = vector.extract_strided_slice %0 {offsets = [0, 2], sizes = [8, 1], strides = [1, 1]} : vector<8x3xf32> to vector<8x1xf32>
    %c2 = arith.constant 2 : index
    %c0_4 = arith.constant 0 : index
    %13 = vector.load %arg2[%c2, %c0_4] : memref<3x256xf32, #tpu.memory_space<vmem>>, vector<1x256xf32>
    %14 = vector.broadcast %12 : vector<8x1xf32> to vector<8x256xf32>
    %15 = vector.broadcast %13 : vector<1x256xf32> to vector<8x256xf32>
    %16 = arith.mulf %14, %15 : vector<8x256xf32>
    %17 = arith.addf %11, %16 : vector<8x256xf32>
    %c0_5 = arith.constant 0 : index
    %c0_6 = arith.constant 0 : index
    %18 = vector.load %arg3[%c0_5, %c0_6] : memref<1x256xf32, #tpu.memory_space<vmem>>, vector<1x256xf32>
    %19 = vector.broadcast %18 : vector<1x256xf32> to vector<8x256xf32>
    %20 = arith.addf %17, %19 : vector<8x256xf32>
    %cst = arith.constant 0.000000e+00 : f32
    %21 = vector.broadcast %cst : f32 to vector<8x256xf32>
    %22 = arith.maximumf %20, %21 : vector<8x256xf32>
    %23 = arith.truncf %22 : vector<8x256xf32> to vector<8x256xbf16>
    %c0_7 = arith.constant 0 : index
    %c0_8 = arith.constant 0 : index
    %24 = vector.load %arg4[%c0_7, %c0_8] : memref<256x128xbf16, #tpu.memory_space<vmem>>, vector<256x128xbf16>
    %cst_9 = arith.constant dense<0.000000e+00> : vector<8x128xf32>
    %25 = tpu.matmul %23, %24, %cst_9 {dimension_numbers = #tpu.dot_dimension_numbers<[1], [0], [0], [1], [0, 0, 1, 1], [], []>} : vector<8x256xbf16>, vector<256x128xbf16>, vector<8x128xf32> -> vector<8x128xf32>
    %c0_10 = arith.constant 0 : index
    %c0_11 = arith.constant 0 : index
    %26 = vector.load %arg5[%c0_10, %c0_11] : memref<1x128xf32, #tpu.memory_space<vmem>>, vector<1x128xf32>
    %27 = vector.broadcast %26 : vector<1x128xf32> to vector<8x128xf32>
    %28 = arith.addf %25, %27 : vector<8x128xf32>
    %c0_12 = arith.constant 0 : index
    %c0_13 = arith.constant 0 : index
    %29 = vector.load %arg6[%c0_12, %c0_13] : memref<8x128xf32, #tpu.memory_space<vmem>>, vector<8x128xf32>
    tpu.vector_store %arg6[%c0_12, %c0_13], %28 {strides = array<i32>} : memref<8x128xf32, #tpu.memory_space<vmem>>, vector<8x128xf32>,
    return
  }
  func.func @transform_0(%arg0: i32) -> (i32, i32) {
    %c0_i32 = arith.constant 0 : i32
    %c0_i32_0 = arith.constant 0 : i32
    return %arg0, %c0_i32 : i32, i32
  }
  func.func @transform_1(%arg0: i32) -> (i32, i32) {
    %c0_i32 = arith.constant 0 : i32
    %c0_i32_0 = arith.constant 0 : i32
    %c0_i32_1 = arith.constant 0 : i32
    return %c0_i32, %c0_i32_0 : i32, i32
  }
  func.func @transform_2(%arg0: i32) -> (i32, i32) {
    %c0_i32 = arith.constant 0 : i32
    %c0_i32_0 = arith.constant 0 : i32
    %c0_i32_1 = arith.constant 0 : i32
    return %c0_i32, %c0_i32_0 : i32, i32
  }
  func.func @transform_3(%arg0: i32) -> (i32, i32) {
    %c0_i32 = arith.constant 0 : i32
    %c0_i32_0 = arith.constant 0 : i32
    %c0_i32_1 = arith.constant 0 : i32
    return %c0_i32, %c0_i32_0 : i32, i32
  }
  func.func @transform_4(%arg0: i32) -> (i32, i32) {
    %c0_i32 = arith.constant 0 : i32
    %c0_i32_0 = arith.constant 0 : i32
    %c0_i32_1 = arith.constant 0 : i32
    return %c0_i32, %c0_i32_0 : i32, i32
  }
  func.func @transform_5(%arg0: i32) -> (i32, i32) {
    %c0_i32 = arith.constant 0 : i32
    %c0_i32_0 = arith.constant 0 : i32
    return %arg0, %c0_i32 : i32, i32
  }
}

module attributes {stable_mosaic.version = 11 : i64} {
  func.func @matmul_kernel(%arg0: i32, %arg1: memref<48x2xf32, #tpu.memory_space<vmem>>, %arg2: memref<2x16xf32, #tpu.memory_space<vmem>>, %arg3: memref<48x16xf32, #tpu.memory_space<vmem>>) attributes {dimension_semantics = [#tpu.dimension_semantics<parallel>], iteration_bounds = array<i64: 1>, scalar_prefetch = 0 : i64, scratch_operands = 0 : i64, tpu.core_type = #tpu.core_type<tc>, window_params = [{transform_indices = @transform_0, window_bounds = array<i64: 48, 2>}, {pipeline_mode = #tpu.pipeline_mode<synchronous>, transform_indices = @transform_1, window_bounds = array<i64: 2, 16>}, {transform_indices = @transform_2, window_bounds = array<i64: 48, 16>}]} {
    %c0 = arith.constant 0 : index
    %c0_0 = arith.constant 0 : index
    %0 = vector.load %arg1[%c0, %c0_0] : memref<48x2xf32, #tpu.memory_space<vmem>>, vector<48x2xf32>
    %c0_1 = arith.constant 0 : index
    %c0_2 = arith.constant 0 : index
    %1 = vector.load %arg2[%c0_1, %c0_2] : memref<2x16xf32, #tpu.memory_space<vmem>>, vector<2x16xf32>
    %cst = arith.constant dense<0.000000e+00> : vector<48x16xf32>
    %2 = tpu.matmul %0, %1, %cst {dimension_numbers = #tpu.dot_dimension_numbers<[1], [0], [0], [1], [0, 0, 1, 1], [], []>} : vector<48x2xf32>, vector<2x16xf32>, vector<48x16xf32> -> vector<48x16xf32>
    %c0_3 = arith.constant 0 : index
    %c0_4 = arith.constant 0 : index
    %3 = vector.load %arg3[%c0_3, %c0_4] : memref<48x16xf32, #tpu.memory_space<vmem>>, vector<48x16xf32>
    tpu.vector_store %arg3[%c0_3, %c0_4], %2 {strides = array<i32>} : memref<48x16xf32, #tpu.memory_space<vmem>>, vector<48x16xf32>,
    return
  }
  func.func @transform_0(%arg0: i32) -> (i32, i32) {
    %c0_i32 = arith.constant 0 : i32
    %c0_i32_0 = arith.constant 0 : i32
    return %arg0, %c0_i32 : i32, i32
  }
  func.func @transform_1(%arg0: i32) -> (i32, i32) {
    %c0_i32 = arith.constant 0 : i32
    %c0_i32_0 = arith.constant 0 : i32
    %c0_i32_1 = arith.constant 0 : i32
    return %c0_i32, %c0_i32_0 : i32, i32
  }
  func.func @transform_2(%arg0: i32) -> (i32, i32) {
    %c0_i32 = arith.constant 0 : i32
    %c0_i32_0 = arith.constant 0 : i32
    return %arg0, %c0_i32 : i32, i32
  }
}

module attributes {stable_mosaic.version = 11 : i64} {
  func.func @matmul_kernel(%arg0: i32, %arg1: memref<352x2xf32, #tpu.memory_space<vmem>>, %arg2: memref<2x16xf32, #tpu.memory_space<vmem>>, %arg3: memref<352x16xf32, #tpu.memory_space<vmem>>) attributes {dimension_semantics = [#tpu.dimension_semantics<parallel>], iteration_bounds = array<i64: 1>, scalar_prefetch = 0 : i64, scratch_operands = 0 : i64, tpu.core_type = #tpu.core_type<tc>, window_params = [{transform_indices = @transform_0, window_bounds = array<i64: 352, 2>}, {pipeline_mode = #tpu.pipeline_mode<synchronous>, transform_indices = @transform_1, window_bounds = array<i64: 2, 16>}, {transform_indices = @transform_2, window_bounds = array<i64: 352, 16>}]} {
    %c0 = arith.constant 0 : index
    %c0_0 = arith.constant 0 : index
    %0 = vector.load %arg1[%c0, %c0_0] : memref<352x2xf32, #tpu.memory_space<vmem>>, vector<352x2xf32>
    %c0_1 = arith.constant 0 : index
    %c0_2 = arith.constant 0 : index
    %1 = vector.load %arg2[%c0_1, %c0_2] : memref<2x16xf32, #tpu.memory_space<vmem>>, vector<2x16xf32>
    %cst = arith.constant dense<0.000000e+00> : vector<352x16xf32>
    %2 = tpu.matmul %0, %1, %cst {dimension_numbers = #tpu.dot_dimension_numbers<[1], [0], [0], [1], [0, 0, 1, 1], [], []>} : vector<352x2xf32>, vector<2x16xf32>, vector<352x16xf32> -> vector<352x16xf32>
    %c0_3 = arith.constant 0 : index
    %c0_4 = arith.constant 0 : index
    %3 = vector.load %arg3[%c0_3, %c0_4] : memref<352x16xf32, #tpu.memory_space<vmem>>, vector<352x16xf32>
    tpu.vector_store %arg3[%c0_3, %c0_4], %2 {strides = array<i32>} : memref<352x16xf32, #tpu.memory_space<vmem>>, vector<352x16xf32>,
    return
  }
  func.func @transform_0(%arg0: i32) -> (i32, i32) {
    %c0_i32 = arith.constant 0 : i32
    %c0_i32_0 = arith.constant 0 : i32
    return %arg0, %c0_i32 : i32, i32
  }
  func.func @transform_1(%arg0: i32) -> (i32, i32) {
    %c0_i32 = arith.constant 0 : i32
    %c0_i32_0 = arith.constant 0 : i32
    %c0_i32_1 = arith.constant 0 : i32
    return %c0_i32, %c0_i32_0 : i32, i32
  }
  func.func @transform_2(%arg0: i32) -> (i32, i32) {
    %c0_i32 = arith.constant 0 : i32
    %c0_i32_0 = arith.constant 0 : i32
    return %arg0, %c0_i32 : i32, i32
  }
}

</mosaic_0001>

<bundles_post_ra>
// kernel: basic_model2_forward.4
= control target key start
LH: loop header
LB: loop body
LE: loop exit
PB: predicated region body
PF: predicated region fallthrough
CT: control target
= control target key end

     0   :  { %vm37_vm0 = vcmask 1041408   ;;  %vm18_vm1 = vcmask 15360   ;;  %vm76_vm2 = vcmask 130048   ;;  %s157_s1 = inlined_call_operand.vmem [shape: f32[2,16], index: 1, kind: input, shape index: {}]   ;;  %s158_s0 = inlined_call_operand.vmem [shape: f32[48,2], index: 0, kind: input, shape index: {}]   ;;  %s159_s2 = inlined_call_operand.vmem [shape: f32[48,16], index: 2, kind: output, shape index: {}]  }
   0x1   :  { %v17_v0 = vld [vmem:[%s157_s1] sm:$0x3]  ;;  %v14_v1 = vld [vmem:[%s158_s0 + $0x18] sm:$0xff]  ;;  %v12_v2 = vld [vmem:[%s158_s0 + $0x8] sm:$0xff] }
   0x2   :  { %95 = vmatpush.msk.msra.mxu2 %vm37_vm0, %v17_v0  ;;  %94 = vmatpush.msk.msra.mxu1 %vm37_vm0, %v17_v0  ;;  %v16_v3 = vld [vmem:[%s158_s0 + $0x28] sm:$0xff]  ;;  %v11_v4 = vld [vmem:[%s158_s0] sm:$0xff]  ;;  %v13_v6 = vld [vmem:[%s158_s0 + $0x10] sm:$0xff] }
   0x3   :  { %91 = vmatmul.msk.f32.vlgmr.msra.gmra.mxu2 %vm18_vm1, %v14_v1  ;;  %89 = vmatmul.msk.f32.vlgmr.msra.gmra.mxu1 %vm18_vm1, %v12_v2  ;;  %v15_v5 = vld [vmem:[%s158_s0 + $0x20] sm:$0xff] }
   0x4   :  { %96 = vmatpush.msk.msra.mxu3 %vm37_vm0, %v17_v0  ;;  %87 = vmatpush.msk.msra.mxu0 %vm37_vm0, %v17_v0 }
   0x5   :  { %93 = vmatmul.msk.f32.vlgmr.msra.gmra.mxu3 %vm18_vm1, %v16_v3  ;;  %88 = vmatmul.msk.f32.vlgmr.msra.gmra.mxu0 %vm18_vm1, %v11_v4 }
   0xb   :  { %92 = vmatmul.msk.f32.gmra.mxu2 %vm18_vm1, %v15_v5  ;;  %90 = vmatmul.msk.f32.gmra.mxu1 %vm18_vm1, %v13_v6 }
  0x80   :  { %v61_v7 = vpop.f32.mrf.mxu1 }
  0x81   :  { %78 = vst.msk [vmem:[%s159_s2 + $0x8] sm:$0xff] %vm76_vm2, %v61_v7 }
  0x82   :  { %v58_v8 = vpop.f32.mrf.mxu0 }
  0x83   :  { %77 = vst.msk [vmem:[%s159_s2] sm:$0xff] %vm76_vm2, %v58_v8 }
  0x86   :  { %v67_v9 = vpop.f32.mrf.mxu2 }
  0x87   :  { %80 = vst.msk [vmem:[%s159_s2 + $0x18] sm:$0xff] %vm76_vm2, %v67_v9 }
  0x88   :  { %v64_v10 = vpop.f32.mrf.mxu1  ;;  %v73_v11 = vpop.f32.mrf.mxu3 }
  0x89   :  { %79 = vst.msk [vmem:[%s159_s2 + $0x10] sm:$0xff] %vm76_vm2, %v64_v10 }
  0x8a   :  { %82 = vst.msk [vmem:[%s159_s2 + $0x28] sm:$0xff] %vm76_vm2, %v73_v11 }
  0x8e   :  { %v70_v12 = vpop.f32.mrf.mxu2 }
  0x8f   :  { %81 = vst.msk [vmem:[%s159_s2 + $0x20] sm:$0xff] %vm76_vm2, %v70_v12 }

// kernel: basic_model2_forward.3
= control target key start
LH: loop header
LB: loop body
LE: loop exit
PB: predicated region body
PF: predicated region fallthrough
CT: control target
= control target key end

     0   :  { %v329_v0 = vmov 0   ;;  %v330_v2 = vmov 2   ;;  %v331_v9 = vmov 1   ;;  %s431_s0 = inlined_call_operand.vmem [shape: f32[8,3], index: 0, kind: input, shape index: {}]   ;;  %s432_s3 = inlined_call_operand.vmem [shape: bf16[256,128], index: 3, kind: input, shape index: {}]   ;;  %s433_s4 = inlined_call_operand.vmem [shape: f32[1,128], index: 4, kind: input, shape index: {}]   ;;  %s434_s1 = inlined_call_operand.vmem [shape: f32[3,256], index: 1, kind: input, shape index: {}]   ;;  %s435_s2 = inlined_call_operand.vmem [shape: f32[1,256], index: 2, kind: input, shape index: {}]   ;;  %s436_s5 = inlined_call_operand.vmem [shape: f32[8,128], index: 5, kind: output, shape index: {}]  }
   0x1   :  { %324 = vset.pattern.permute.xlu0 %v329_v0  ;;  %v20_v1 = vld [vmem:[%s431_s0] sm:$0xff]  ;;  %326 = vset.pattern.permute.xlu1 %v330_v2  ;;  %v312_v3 = vld [vmem:[%s432_s3 + $0x38] sm:$0xff]  ;;  %v311_v5 = vld [vmem:[%s432_s3 + $0x30] sm:$0xff] }
   0x2   :  { %v320_v4 = vld [vmem:[%s432_s3 + $0x78] sm:$0xff]  ;;  %24 = vperm.xlu0 %324, %v20_v1   ;;  %52 = vperm.xlu1 %326, %v20_v1   ;;  %v319_v6 = vld [vmem:[%s432_s3 + $0x70] sm:$0xff]  ;;  %v310_v7 = vld [vmem:[%s432_s3 + $0x28] sm:$0xff] }
   0x3   :  { %208 = vmatpush.bf16.msra.mxu0 %v312_v3  ;;  %221 = vmatpush.bf16.msra.mxu1 %v320_v4  ;;  %v318_v8 = vld [vmem:[%s432_s3 + $0x68] sm:$0xff]  ;;  %v309_v10 = vld [vmem:[%s432_s3 + $0x20] sm:$0xff]  ;;  %v308_v12 = vld [vmem:[%s432_s3 + $0x18] sm:$0xff] }
   0x4   :  { %v317_v11 = vld [vmem:[%s432_s3 + $0x60] sm:$0xff]  ;;  %v316_v13 = vld [vmem:[%s432_s3 + $0x58] sm:$0xff]  ;;  %v307_v14 = vld [vmem:[%s432_s3 + $0x10] sm:$0xff] }
   0x5   :  { %v315_v15 = vld [vmem:[%s432_s3 + $0x50] sm:$0xff]  ;;  %v306_v16 = vld [vmem:[%s432_s3 + $0x8] sm:$0xff]  ;;  %v305_v18 = vld [vmem:[%s432_s3] sm:$0xff] }
   0x6   :  { %v314_v17 = vld [vmem:[%s432_s3 + $0x48] sm:$0xff]  ;;  %v313_v19 = vld [vmem:[%s432_s3 + $0x40] sm:$0xff] }
   0x7   :  { %209 = vmatpush.bf16.msra.mxu0 %v311_v5  ;;  %222 = vmatpush.bf16.msra.mxu1 %v319_v6  ;;  %v21_v21 = vld [vmem:[%s434_s1] ss:$4 sm:$0x3]  ;;  %v239_v22 = vld [vmem:[%s434_s1 + $0x1] ss:$4 sm:$0x3] }
   0x8   :  { %v240_v23 = vld [vmem:[%s434_s1 + $0x2] ss:$4 sm:$0x3]  ;;  %v28_v24 = vperm.slane %v21_v21, 0  ;;  %v29_v25 = vperm.slane %v21_v21, 1  ;;  %v41_v26 = vperm.slane %v239_v22, 0 }
   0x9   :  { %v42_v27 = vperm.slane %v239_v22, 1  ;;  %v56_v28 = vperm.slane %v240_v23, 0  ;;  %v57_v29 = vperm.slane %v240_v23, 1  ;;  %v64_v34 = vld [vmem:[%s435_s2] sm:$0x3] }
   0xa   :  { %325 = vset.pattern.permute.xlu0 %v331_v9  ;;  %v66_v41 = vperm.slane %v64_v34, 0  ;;  %v67_v42 = vperm.slane %v64_v34, 1  ;;  %v328_v51 = vld [vmem:[%s433_s4] ss:$0 sm:$0xff] }
   0xb   :  { %37 = vperm.xlu0 %325, %v20_v1   ;;  %210 = vmatpush.bf16.msra.mxu0 %v310_v7 }
   0xc   :  { %223 = vmatpush.bf16.msra.mxu1 %v318_v8 }
   0xf   :  { %211 = vmatpush.bf16.msra.mxu0 %v309_v10 }
  0x10   :  { %224 = vmatpush.bf16.msra.mxu1 %v317_v11 }
  0x13   :  { %327 = vset.pattern.permute.xlu0 %v330_v2  ;;  %212 = vmatpush.bf16.msra.mxu0 %v308_v12 }
  0x14   :  { %225 = vmatpush.bf16.msra.mxu1 %v316_v13 }
  0x17   :  { %213 = vmatpush.bf16.msra.mxu0 %v307_v14 }
  0x18   :  { %226 = vmatpush.bf16.msra.mxu1 %v315_v15 }
  0x1b   :  { %214 = vmatpush.bf16.msra.mxu0 %v306_v16 }
  0x1c   :  { %227 = vmatpush.bf16.msra.mxu1 %v314_v17 }
  0x1f   :  { %215 = vmatpush.bf16.msra.mxu0 %v305_v18 }
  0x20   :  { %228 = vmatpush.bf16.msra.mxu1 %v313_v19 }
  0x74   :  { %v25_v20 = vpop.permute.xlu0 %24  ;;  %v53_v30 = vpop.permute.xlu1 %52 }
  0x75   :  { %v32_v31 = vmul.f32 %v28_v24, %v25_v20  ;;  %v33_v32 = vmul.f32 %v29_v25, %v25_v20  ;;  %v60_v37 = vmul.f32 %v56_v28, %v53_v30  ;;  %v61_v38 = vmul.f32 %v57_v29, %v53_v30 }
  0x7d   :  { %v38_v33 = vpop.permute.xlu0 %37 }
  0x7e   :  { %v45_v35 = vmul.f32 %v41_v26, %v38_v33  ;;  %v46_v36 = vmul.f32 %v42_v27, %v38_v33 }
  0x80   :  { %v47_v39 = vadd.f32 %v45_v35, %v32_v31  ;;  %v48_v40 = vadd.f32 %v46_v36, %v33_v32 }
  0x82   :  { %v62_v43 = vadd.f32 %v60_v37, %v47_v39  ;;  %v63_v44 = vadd.f32 %v61_v38, %v48_v40 }
  0x84   :  { %v70_v45 = vadd.f32 %v66_v41, %v62_v43  ;;  %v71_v46 = vadd.f32 %v67_v42, %v63_v44 }
  0x86   :  { %v72_v47 = vmax.f32 %v70_v45, 0.0  ;;  %v73_v48 = vmax.f32 %v71_v46, 0.0 }
  0x88   :  { %v74_v49 = vpack.c.bf16 %v72_v47, %v72_v47  ;;  %v75_v50 = vpack.c.bf16 %v73_v48, %v73_v48 }
  0x8a   :  { %216 = vmatmul.bf16.vlgmr.msra.gmra.mxu0 %v74_v49  ;;  %229 = vmatmul.bf16.vlgmr.msra.gmra.mxu1 %v75_v50 }
 0x107   :  { %v217_v52 = vpop.f32.mrf.mxu0  ;;  %v230_v53 = vpop.f32.mrf.mxu1 }
 0x108   :  { %v218_v54 = vadd.f32 %v328_v51, %v217_v52 }
 0x10a   :  { %v231_v55 = vadd.f32 %v230_v53, %v218_v54 }
 0x10c   :  { %234 = vst [vmem:[%s436_s5] sm:$0xff] %v231_v55 }
 0x10f   :  { %v219_v56 = vpop.f32.mrf.mxu0  ;;  %v232_v57 = vpop.f32.mrf.mxu1 }

// kernel: basic_model2_forward.5
= control target key start
LH: loop header
LB: loop body
LE: loop exit
PB: predicated region body
PF: predicated region fallthrough
CT: control target
= control target key end

     0   :  { %vm189_vm0 = vcmask 1041408   ;;  %vm56_vm1 = vcmask 15360   ;;  %vm342_vm2 = vcmask 130048   ;;  %s809_s1 = inlined_call_operand.vmem [shape: f32[2,16], index: 1, kind: input, shape index: {}]   ;;  %s810_s0 = inlined_call_operand.vmem [shape: f32[352,2], index: 0, kind: input, shape index: {}]   ;;  %s811_s2 = inlined_call_operand.vmem [shape: f32[352,16], index: 2, kind: output, shape index: {}]  }
   0x1   :  { %v55_v0 = vld [vmem:[%s809_s1] sm:$0x3]  ;;  %v33_v1 = vld [vmem:[%s810_s0 + $0xb0] sm:$0xff]  ;;  %v44_v2 = vld [vmem:[%s810_s0 + $0x108] sm:$0xff] }
   0x2   :  { %437 = vmatpush.msk.msra.mxu2 %vm189_vm0, %v55_v0  ;;  %438 = vmatpush.msk.msra.mxu3 %vm189_vm0, %v55_v0  ;;  %v11_v3 = vld [vmem:[%s810_s0] sm:$0xff]  ;;  %v22_v4 = vld [vmem:[%s810_s0 + $0x58] sm:$0xff]  ;;  %v45_v6 = vld [vmem:[%s810_s0 + $0x110] sm:$0xff] }
   0x3   :  { %414 = vmatmul.msk.f32.vlgmr.msra.gmra.mxu2 %vm56_vm1, %v33_v1  ;;  %425 = vmatmul.msk.f32.vlgmr.msra.gmra.mxu3 %vm56_vm1, %v44_v2  ;;  %v34_v5 = vld [vmem:[%s810_s0 + $0xb8] sm:$0xff]  ;;  %v12_v7 = vld [vmem:[%s810_s0 + $0x8] sm:$0xff]  ;;  %v23_v8 = vld [vmem:[%s810_s0 + $0x60] sm:$0xff] }
   0x4   :  { %391 = vmatpush.msk.msra.mxu0 %vm189_vm0, %v55_v0  ;;  %436 = vmatpush.msk.msra.mxu1 %vm189_vm0, %v55_v0  ;;  %v35_v9 = vld [vmem:[%s810_s0 + $0xc0] sm:$0xff]  ;;  %v46_v10 = vld [vmem:[%s810_s0 + $0x118] sm:$0xff]  ;;  %v13_v11 = vld [vmem:[%s810_s0 + $0x10] sm:$0xff] }
   0x5   :  { %392 = vmatmul.msk.f32.vlgmr.msra.gmra.mxu0 %vm56_vm1, %v11_v3  ;;  %403 = vmatmul.msk.f32.vlgmr.msra.gmra.mxu1 %vm56_vm1, %v22_v4  ;;  %v24_v12 = vld [vmem:[%s810_s0 + $0x68] sm:$0xff]  ;;  %v47_v14 = vld [vmem:[%s810_s0 + $0x120] sm:$0xff]  ;;  %v14_v15 = vld [vmem:[%s810_s0 + $0x18] sm:$0xff] }
   0x6   :  { %v36_v13 = vld [vmem:[%s810_s0 + $0xc8] sm:$0xff]  ;;  %v25_v16 = vld [vmem:[%s810_s0 + $0x70] sm:$0xff]  ;;  %v15_v19 = vld [vmem:[%s810_s0 + $0x20] sm:$0xff] }
   0x7   :  { %v37_v17 = vld [vmem:[%s810_s0 + $0xd0] sm:$0xff]  ;;  %v48_v18 = vld [vmem:[%s810_s0 + $0x128] sm:$0xff]  ;;  %v26_v20 = vld [vmem:[%s810_s0 + $0x78] sm:$0xff] }
   0x8   :  { %v38_v21 = vld [vmem:[%s810_s0 + $0xd8] sm:$0xff]  ;;  %v49_v22 = vld [vmem:[%s810_s0 + $0x130] sm:$0xff]  ;;  %v16_v23 = vld [vmem:[%s810_s0 + $0x28] sm:$0xff] }
   0x9   :  { %v27_v24 = vld [vmem:[%s810_s0 + $0x80] sm:$0xff]  ;;  %v50_v26 = vld [vmem:[%s810_s0 + $0x138] sm:$0xff]  ;;  %v17_v27 = vld [vmem:[%s810_s0 + $0x30] sm:$0xff] }
   0xa   :  { %v39_v25 = vld [vmem:[%s810_s0 + $0xe0] sm:$0xff]  ;;  %v28_v28 = vld [vmem:[%s810_s0 + $0x88] sm:$0xff]  ;;  %v18_v31 = vld [vmem:[%s810_s0 + $0x38] sm:$0xff] }
   0xb   :  { %415 = vmatmul.msk.f32.gmra.mxu2 %vm56_vm1, %v34_v5  ;;  %426 = vmatmul.msk.f32.gmra.mxu3 %vm56_vm1, %v45_v6  ;;  %v40_v29 = vld [vmem:[%s810_s0 + $0xe8] sm:$0xff]  ;;  %v51_v30 = vld [vmem:[%s810_s0 + $0x140] sm:$0xff]  ;;  %v29_v32 = vld [vmem:[%s810_s0 + $0x90] sm:$0xff] }
   0xc   :  { %v41_v33 = vld [vmem:[%s810_s0 + $0xf0] sm:$0xff]  ;;  %v52_v34 = vld [vmem:[%s810_s0 + $0x148] sm:$0xff]  ;;  %v19_v35 = vld [vmem:[%s810_s0 + $0x40] sm:$0xff] }
   0xd   :  { %393 = vmatmul.msk.f32.gmra.mxu0 %vm56_vm1, %v12_v7  ;;  %404 = vmatmul.msk.f32.gmra.mxu1 %vm56_vm1, %v23_v8  ;;  %v30_v36 = vld [vmem:[%s810_s0 + $0x98] sm:$0xff]  ;;  %v53_v38 = vld [vmem:[%s810_s0 + $0x150] sm:$0xff]  ;;  %v20_v39 = vld [vmem:[%s810_s0 + $0x48] sm:$0xff] }
   0xe   :  { %v42_v37 = vld [vmem:[%s810_s0 + $0xf8] sm:$0xff]  ;;  %v31_v40 = vld [vmem:[%s810_s0 + $0xa0] sm:$0xff]  ;;  %v21_v43 = vld [vmem:[%s810_s0 + $0x50] sm:$0xff] }
   0xf   :  { %v43_v41 = vld [vmem:[%s810_s0 + $0x100] sm:$0xff]  ;;  %v54_v42 = vld [vmem:[%s810_s0 + $0x158] sm:$0xff]  ;;  %v32_v44 = vld [vmem:[%s810_s0 + $0xa8] sm:$0xff] }
  0x13   :  { %416 = vmatmul.msk.f32.gmra.mxu2 %vm56_vm1, %v35_v9  ;;  %427 = vmatmul.msk.f32.gmra.mxu3 %vm56_vm1, %v46_v10 }
  0x15   :  { %394 = vmatmul.msk.f32.gmra.mxu0 %vm56_vm1, %v13_v11  ;;  %405 = vmatmul.msk.f32.gmra.mxu1 %vm56_vm1, %v24_v12 }
  0x1b   :  { %417 = vmatmul.msk.f32.gmra.mxu2 %vm56_vm1, %v36_v13  ;;  %428 = vmatmul.msk.f32.gmra.mxu3 %vm56_vm1, %v47_v14 }
  0x1d   :  { %395 = vmatmul.msk.f32.gmra.mxu0 %vm56_vm1, %v14_v15  ;;  %406 = vmatmul.msk.f32.gmra.mxu1 %vm56_vm1, %v25_v16 }
  0x23   :  { %418 = vmatmul.msk.f32.gmra.mxu2 %vm56_vm1, %v37_v17  ;;  %429 = vmatmul.msk.f32.gmra.mxu3 %vm56_vm1, %v48_v18 }
  0x25   :  { %396 = vmatmul.msk.f32.gmra.mxu0 %vm56_vm1, %v15_v19  ;;  %407 = vmatmul.msk.f32.gmra.mxu1 %vm56_vm1, %v26_v20 }
  0x2b   :  { %419 = vmatmul.msk.f32.gmra.mxu2 %vm56_vm1, %v38_v21  ;;  %430 = vmatmul.msk.f32.gmra.mxu3 %vm56_vm1, %v49_v22 }
  0x2d   :  { %397 = vmatmul.msk.f32.gmra.mxu0 %vm56_vm1, %v16_v23  ;;  %408 = vmatmul.msk.f32.gmra.mxu1 %vm56_vm1, %v27_v24 }
  0x33   :  { %420 = vmatmul.msk.f32.gmra.mxu2 %vm56_vm1, %v39_v25  ;;  %431 = vmatmul.msk.f32.gmra.mxu3 %vm56_vm1, %v50_v26 }
  0x35   :  { %398 = vmatmul.msk.f32.gmra.mxu0 %vm56_vm1, %v17_v27  ;;  %409 = vmatmul.msk.f32.gmra.mxu1 %vm56_vm1, %v28_v28 }
  0x3b   :  { %421 = vmatmul.msk.f32.gmra.mxu2 %vm56_vm1, %v40_v29  ;;  %432 = vmatmul.msk.f32.gmra.mxu3 %vm56_vm1, %v51_v30 }
  0x3d   :  { %399 = vmatmul.msk.f32.gmra.mxu0 %vm56_vm1, %v18_v31  ;;  %410 = vmatmul.msk.f32.gmra.mxu1 %vm56_vm1, %v29_v32 }
  0x43   :  { %422 = vmatmul.msk.f32.gmra.mxu2 %vm56_vm1, %v41_v33  ;;  %433 = vmatmul.msk.f32.gmra.mxu3 %vm56_vm1, %v52_v34 }
  0x45   :  { %400 = vmatmul.msk.f32.gmra.mxu0 %vm56_vm1, %v19_v35  ;;  %411 = vmatmul.msk.f32.gmra.mxu1 %vm56_vm1, %v30_v36 }
  0x4b   :  { %423 = vmatmul.msk.f32.gmra.mxu2 %vm56_vm1, %v42_v37  ;;  %434 = vmatmul.msk.f32.gmra.mxu3 %vm56_vm1, %v53_v38 }
  0x4d   :  { %401 = vmatmul.msk.f32.gmra.mxu0 %vm56_vm1, %v20_v39  ;;  %412 = vmatmul.msk.f32.gmra.mxu1 %vm56_vm1, %v31_v40 }
  0x53   :  { %424 = vmatmul.msk.f32.gmra.mxu2 %vm56_vm1, %v43_v41  ;;  %435 = vmatmul.msk.f32.gmra.mxu3 %vm56_vm1, %v54_v42 }
  0x55   :  { %402 = vmatmul.msk.f32.gmra.mxu0 %vm56_vm1, %v21_v43  ;;  %413 = vmatmul.msk.f32.gmra.mxu1 %vm56_vm1, %v32_v44 }
  0x82   :  { %v210_v45 = vpop.f32.mrf.mxu0  ;;  %v243_v46 = vpop.f32.mrf.mxu1 }
  0x83   :  { %343 = vst.msk [vmem:[%s811_s2] sm:$0xff] %vm342_vm2, %v210_v45 }
  0x84   :  { %354 = vst.msk [vmem:[%s811_s2 + $0x58] sm:$0xff] %vm342_vm2, %v243_v46 }
  0x86   :  { %v276_v47 = vpop.f32.mrf.mxu2  ;;  %v309_v48 = vpop.f32.mrf.mxu3 }
  0x87   :  { %365 = vst.msk [vmem:[%s811_s2 + $0xb0] sm:$0xff] %vm342_vm2, %v276_v47 }
  0x88   :  { %376 = vst.msk [vmem:[%s811_s2 + $0x108] sm:$0xff] %vm342_vm2, %v309_v48 }
  0x8a   :  { %v213_v49 = vpop.f32.mrf.mxu0  ;;  %v246_v50 = vpop.f32.mrf.mxu1 }
  0x8b   :  { %344 = vst.msk [vmem:[%s811_s2 + $0x8] sm:$0xff] %vm342_vm2, %v213_v49 }
  0x8c   :  { %355 = vst.msk [vmem:[%s811_s2 + $0x60] sm:$0xff] %vm342_vm2, %v246_v50 }
  0x8e   :  { %v279_v51 = vpop.f32.mrf.mxu2  ;;  %v312_v52 = vpop.f32.mrf.mxu3 }
  0x8f   :  { %366 = vst.msk [vmem:[%s811_s2 + $0xb8] sm:$0xff] %vm342_vm2, %v279_v51 }
  0x90   :  { %377 = vst.msk [vmem:[%s811_s2 + $0x110] sm:$0xff] %vm342_vm2, %v312_v52 }
  0x92   :  { %v216_v53 = vpop.f32.mrf.mxu0  ;;  %v249_v54 = vpop.f32.mrf.mxu1 }
  0x93   :  { %345 = vst.msk [vmem:[%s811_s2 + $0x10] sm:$0xff] %vm342_vm2, %v216_v53 }
  0x94   :  { %356 = vst.msk [vmem:[%s811_s2 + $0x68] sm:$0xff] %vm342_vm2, %v249_v54 }
  0x96   :  { %v282_v55 = vpop.f32.mrf.mxu2  ;;  %v315_v56 = vpop.f32.mrf.mxu3 }
  0x97   :  { %367 = vst.msk [vmem:[%s811_s2 + $0xc0] sm:$0xff] %vm342_vm2, %v282_v55 }
  0x98   :  { %378 = vst.msk [vmem:[%s811_s2 + $0x118] sm:$0xff] %vm342_vm2, %v315_v56 }
  0x9a   :  { %v219_v57 = vpop.f32.mrf.mxu0  ;;  %v252_v58 = vpop.f32.mrf.mxu1 }
  0x9b   :  { %346 = vst.msk [vmem:[%s811_s2 + $0x18] sm:$0xff] %vm342_vm2, %v219_v57 }
  0x9c   :  { %357 = vst.msk [vmem:[%s811_s2 + $0x70] sm:$0xff] %vm342_vm2, %v252_v58 }
  0x9e   :  { %v285_v59 = vpop.f32.mrf.mxu2  ;;  %v318_v60 = vpop.f32.mrf.mxu3 }
  0x9f   :  { %368 = vst.msk [vmem:[%s811_s2 + $0xc8] sm:$0xff] %vm342_vm2, %v285_v59 }
  0xa0   :  { %379 = vst.msk [vmem:[%s811_s2 + $0x120] sm:$0xff] %vm342_vm2, %v318_v60 }
  0xa2   :  { %v222_v61 = vpop.f32.mrf.mxu0  ;;  %v255_v62 = vpop.f32.mrf.mxu1 }
  0xa3   :  { %347 = vst.msk [vmem:[%s811_s2 + $0x20] sm:$0xff] %vm342_vm2, %v222_v61 }
  0xa4   :  { %358 = vst.msk [vmem:[%s811_s2 + $0x78] sm:$0xff] %vm342_vm2, %v255_v62 }
  0xa6   :  { %v288_v63 = vpop.f32.mrf.mxu2  ;;  %v321_v0 = vpop.f32.mrf.mxu3 }
  0xa7   :  { %369 = vst.msk [vmem:[%s811_s2 + $0xd0] sm:$0xff] %vm342_vm2, %v288_v63 }
  0xa8   :  { %380 = vst.msk [vmem:[%s811_s2 + $0x128] sm:$0xff] %vm342_vm2, %v321_v0 }
  0xaa   :  { %v225_v1 = vpop.f32.mrf.mxu0  ;;  %v258_v2 = vpop.f32.mrf.mxu1 }
  0xab   :  { %348 = vst.msk [vmem:[%s811_s2 + $0x28] sm:$0xff] %vm342_vm2, %v225_v1 }
  0xac   :  { %359 = vst.msk [vmem:[%s811_s2 + $0x80] sm:$0xff] %vm342_vm2, %v258_v2 }
  0xae   :  { %v291_v3 = vpop.f32.mrf.mxu2  ;;  %v324_v4 = vpop.f32.mrf.mxu3 }
  0xaf   :  { %370 = vst.msk [vmem:[%s811_s2 + $0xd8] sm:$0xff] %vm342_vm2, %v291_v3 }
  0xb0   :  { %381 = vst.msk [vmem:[%s811_s2 + $0x130] sm:$0xff] %vm342_vm2, %v324_v4 }
  0xb2   :  { %v228_v5 = vpop.f32.mrf.mxu0  ;;  %v261_v6 = vpop.f32.mrf.mxu1 }
  0xb3   :  { %349 = vst.msk [vmem:[%s811_s2 + $0x30] sm:$0xff] %vm342_vm2, %v228_v5 }
  0xb4   :  { %360 = vst.msk [vmem:[%s811_s2 + $0x88] sm:$0xff] %vm342_vm2, %v261_v6 }
  0xb6   :  { %v294_v7 = vpop.f32.mrf.mxu2  ;;  %v327_v8 = vpop.f32.mrf.mxu3 }
  0xb7   :  { %371 = vst.msk [vmem:[%s811_s2 + $0xe0] sm:$0xff] %vm342_vm2, %v294_v7 }
  0xb8   :  { %382 = vst.msk [vmem:[%s811_s2 + $0x138] sm:$0xff] %vm342_vm2, %v327_v8 }
  0xba   :  { %v231_v9 = vpop.f32.mrf.mxu0  ;;  %v264_v10 = vpop.f32.mrf.mxu1 }
  0xbb   :  { %350 = vst.msk [vmem:[%s811_s2 + $0x38] sm:$0xff] %vm342_vm2, %v231_v9 }
  0xbc   :  { %361 = vst.msk [vmem:[%s811_s2 + $0x90] sm:$0xff] %vm342_vm2, %v264_v10 }
  0xbe   :  { %v297_v11 = vpop.f32.mrf.mxu2  ;;  %v330_v12 = vpop.f32.mrf.mxu3 }
  0xbf   :  { %372 = vst.msk [vmem:[%s811_s2 + $0xe8] sm:$0xff] %vm342_vm2, %v297_v11 }
  0xc0   :  { %383 = vst.msk [vmem:[%s811_s2 + $0x140] sm:$0xff] %vm342_vm2, %v330_v12 }
  0xc2   :  { %v234_v13 = vpop.f32.mrf.mxu0  ;;  %v267_v14 = vpop.f32.mrf.mxu1 }
  0xc3   :  { %351 = vst.msk [vmem:[%s811_s2 + $0x40] sm:$0xff] %vm342_vm2, %v234_v13 }
  0xc4   :  { %362 = vst.msk [vmem:[%s811_s2 + $0x98] sm:$0xff] %vm342_vm2, %v267_v14 }
  0xc6   :  { %v300_v15 = vpop.f32.mrf.mxu2  ;;  %v333_v16 = vpop.f32.mrf.mxu3 }
  0xc7   :  { %373 = vst.msk [vmem:[%s811_s2 + $0xf0] sm:$0xff] %vm342_vm2, %v300_v15 }
  0xc8   :  { %384 = vst.msk [vmem:[%s811_s2 + $0x148] sm:$0xff] %vm342_vm2, %v333_v16 }
  0xca   :  { %v237_v17 = vpop.f32.mrf.mxu0  ;;  %v270_v18 = vpop.f32.mrf.mxu1 }
  0xcb   :  { %352 = vst.msk [vmem:[%s811_s2 + $0x48] sm:$0xff] %vm342_vm2, %v237_v17 }
  0xcc   :  { %363 = vst.msk [vmem:[%s811_s2 + $0xa0] sm:$0xff] %vm342_vm2, %v270_v18 }
  0xce   :  { %v303_v19 = vpop.f32.mrf.mxu2  ;;  %v336_v20 = vpop.f32.mrf.mxu3 }
  0xcf   :  { %374 = vst.msk [vmem:[%s811_s2 + $0xf8] sm:$0xff] %vm342_vm2, %v303_v19 }
  0xd0   :  { %385 = vst.msk [vmem:[%s811_s2 + $0x150] sm:$0xff] %vm342_vm2, %v336_v20 }
  0xd2   :  { %v240_v21 = vpop.f32.mrf.mxu0  ;;  %v273_v22 = vpop.f32.mrf.mxu1 }
  0xd3   :  { %353 = vst.msk [vmem:[%s811_s2 + $0x50] sm:$0xff] %vm342_vm2, %v240_v21 }
  0xd4   :  { %364 = vst.msk [vmem:[%s811_s2 + $0xa8] sm:$0xff] %vm342_vm2, %v273_v22 }
  0xd6   :  { %v306_v23 = vpop.f32.mrf.mxu2  ;;  %v339_v24 = vpop.f32.mrf.mxu3 }
  0xd7   :  { %375 = vst.msk [vmem:[%s811_s2 + $0x100] sm:$0xff] %vm342_vm2, %v306_v23 }
  0xd8   :  { %386 = vst.msk [vmem:[%s811_s2 + $0x158] sm:$0xff] %vm342_vm2, %v339_v24 }

</bundles_post_ra>
